<compile_context>
chip_gen: v7x
topology: tpu7x:2x2x1
jax: 0.10.0
libtpu: 0.0.40
codegen_flags: <defaults>
</compile_context>

<pallas_src>
import jax
import jax.numpy as jnp
from jax.experimental import pallas as pl
from jax.experimental.pallas import tpu as pltpu


def _round_up(x, m):
    return (x + m - 1) // m * m


def _largest_aligned_divisor_tile(total, unit, max_tile, fits=None):
    """Largest t = d*unit with d | (total//unit), t <= max_tile, fits(t)."""
    m = total // unit
    best = unit
    for d in range(1, m + 1):
        if m % d:
            continue
        t = d * unit
        if t <= max_tile and (fits is None or fits(t)):
            best = t
    return best


def _shape_layer_kernel(params_ref, comp_ref, mean_ref, out_ref):
    # params_ref: (TB, K)  MXU dtype (f32 or bf16); zero-padded batch rows
    # comp_ref:   (K, TN)  component-matrix tile (f32 or bf16 storage)
    # mean_ref:   (1, TN)  f32 mean-shape tile (kept full precision)
    # out_ref:    (TB, TN)
    acc = jnp.dot(params_ref[...], comp_ref[...],
                  preferred_element_type=jnp.float32)
    out_ref[...] = (acc + mean_ref[...]).astype(out_ref.dtype)


class ShapeLayerPallas:
    """Pallas equivalent of _ShapeLayerCpp: buffers prepped once, cheap forward."""

    def __init__(self, shape_mean, shape_components, *,
                 component_dtype=jnp.float32, out_dtype=jnp.float32,
                 max_tile_n=8192, max_tile_b=512):
        # shape_mean: (1, N, D) ; shape_components: (1, K, N, D)
        self.K = int(shape_components.shape[1])
        self.N = int(shape_components.shape[2])
        self.D = int(shape_components.shape[3])
        self.ND = self.N * self.D
        self.ND_pad = _round_up(self.ND, 128)     # pad only to lane granule
        self.component_dtype = jnp.dtype(component_dtype)
        self.out_dtype = jnp.dtype(out_dtype)
        self.max_tile_n = int(max_tile_n)
        self.max_tile_b = int(max_tile_b)

        comp2d = jnp.asarray(shape_components).reshape(self.K, self.ND)
        mean2d = jnp.asarray(shape_mean).reshape(1, self.ND).astype(jnp.float32)

        comp_p = jnp.zeros((self.K, self.ND_pad), self.component_dtype)
        comp_p = comp_p.at[:, :self.ND].set(comp2d.astype(self.component_dtype))
        mean_p = jnp.zeros((1, self.ND_pad), jnp.float32)
        mean_p = mean_p.at[:, :self.ND].set(mean2d)

        # Constant buffers: built once, reused every forward (no per-call prep).
        self._comp_p = jax.device_put(comp_p)
        self._mean_p = jax.device_put(mean_p)
        self._fwd_cache = {}

    @property
    def num_params(self):
        return self.K

    def _build_forward(self, B):
        K, ND, ND_pad = self.K, self.ND, self.ND_pad
        N, D = self.N, self.D
        B_pad = _round_up(B, 8)
        cb = self.component_dtype.itemsize
        pb = cb                      # params pre-cast to component dtype
        ob = self.out_dtype.itemsize
        mxu_dtype = self.component_dtype

        TB = _largest_aligned_divisor_tile(B_pad, 8, self.max_tile_b)

        tile_budget = 32 * 1024 * 1024  # double-buffered working-set budget

        def fits(tn):
            return 2 * (TB * K * pb + K * tn * cb + tn * 4 + TB * tn * ob) <= tile_budget

        TN = _largest_aligned_divisor_tile(ND_pad, 128, self.max_tile_n, fits)

        tile_bytes = 2 * (TB * K * pb + K * TN * cb + TN * 4 + TB * TN * ob)
        # >= tile working set, capped at 48 MiB (safe under v7x's 64 MiB VMEM).
        vmem_limit = int(min(max(tile_bytes + (8 << 20), 16 << 20), 48 << 20))

        # ND outermost: megacore shards the dominant comp/out traffic on v7x,
        # and the comp tile stays resident across the inner B loop.
        grid = (ND_pad // TN, B_pad // TB)

        cost = pl.CostEstimate(
            flops=2 * B_pad * K * ND_pad,
            transcendentals=0,
            bytes_accessed=(B_pad * K * pb + K * ND_pad * cb
                            + ND_pad * 4 + B_pad * ND_pad * ob),
        )

        kernel_call = pl.pallas_call(
            _shape_layer_kernel,
            out_shape=jax.ShapeDtypeStruct((B_pad, ND_pad), self.out_dtype),
            grid=grid,
            in_specs=[
                pl.BlockSpec((TB, K), lambda j, i: (i, 0)),   # params
                pl.BlockSpec((K, TN), lambda j, i: (0, j)),   # components
                pl.BlockSpec((1, TN), lambda j, i: (0, j)),   # f32 mean
            ],
            out_specs=pl.BlockSpec((TB, TN), lambda j, i: (i, j)),
            compiler_params=pltpu.CompilerParams(
                dimension_semantics=("parallel", "parallel"),
                vmem_limit_bytes=vmem_limit,
            ),
            cost_estimate=cost,
        )

        def fwd(shape_params, comp_p, mean_p):
            params2d = shape_params.reshape(B, K).astype(mxu_dtype)
            if B_pad != B:
                params_p = jnp.zeros((B_pad, K), mxu_dtype).at[:B, :].set(params2d)
            else:
                params_p = params2d
            out_p = kernel_call(params_p, comp_p, mean_p)
            if B_pad != B or ND_pad != ND:        # slice only when padding existed
                out_p = out_p[:B, :ND]
            return out_p.reshape(B, N, D)

        jitted = jax.jit(fwd)
        return lambda p: jitted(p, self._comp_p, self._mean_p)

    def __call__(self, shape_params):
        B = int(shape_params.shape[0])
        fwd = self._fwd_cache.get(B)
        if fwd is None:
            fwd = self._build_forward(B)
            self._fwd_cache[B] = fwd
        return fwd(shape_params)


def reference_forward(shape_params, shape_mean, shape_components):
    # Pure-JAX reference mirroring the PyTorch semantics exactly.
    B = shape_params.shape[0]
    params = shape_params.reshape(B, -1)              # (B, K)
    comps = shape_components[0]                       # (K, N, D)
    weighted = jnp.einsum("bk,knd->bnd", params, comps)
    return shape_mean[0][None, ...] + weighted


if __name__ == "__main__":
    # --- small toy shapes (B=2, K=8, N=16, D=2) ------------------------------
    k1, k2, k3 = jax.random.split(jax.random.PRNGKey(0), 3)
    B, K, N, D = 2, 8, 16, 2
    shape_mean = jax.random.normal(k1, (1, N, D), dtype=jnp.float32)
    shape_components = jax.random.normal(k2, (1, K, N, D), dtype=jnp.float32)
    shape_params = jax.random.normal(k3, (B, K, 1, 1), dtype=jnp.float32)

    layer = ShapeLayerPallas(shape_mean, shape_components)
    out = jax.block_until_ready(layer(shape_params))
    ref = reference_forward(shape_params, shape_mean, shape_components)
    assert out.shape == (B, N, D), out.shape
    assert layer.num_params == K
    assert jnp.allclose(out, ref, atol=1e-5, rtol=1e-5), "mismatch vs reference (f32)"

    # --- larger shapes exercising ND tiling (ND=1800 -> padded to 1920) ------
    k4, k5, k6 = jax.random.split(jax.random.PRNGKey(1), 3)
    B2, K2, N2, D2 = 20, 12, 600, 3
    mean2 = jax.random.normal(k4, (1, N2, D2), dtype=jnp.float32)
    comps2 = jax.random.normal(k5, (1, K2, N2, D2), dtype=jnp.float32)
    params2 = jax.random.normal(k6, (B2, K2, 1, 1), dtype=jnp.float32)

    layer2 = ShapeLayerPallas(mean2, comps2)
    out2 = jax.block_until_ready(layer2(params2))
    ref2 = reference_forward(params2, mean2, comps2)
    assert out2.shape == (B2, N2, D2), out2.shape
    assert jnp.allclose(out2, ref2, atol=1e-4, rtol=1e-4), "mismatch vs reference (tiled f32)"

    # --- bf16-stored components (halved comp HBM read), mean kept in f32 -----
    layer3 = ShapeLayerPallas(mean2, comps2, component_dtype=jnp.bfloat16)
    out3 = jax.block_until_ready(layer3(params2))
    ref3 = reference_forward(
        params2.astype(jnp.bfloat16).astype(jnp.float32),
        mean2,   # mean stays full precision in the Pallas path
        comps2.astype(jnp.bfloat16).astype(jnp.float32),
    )
    assert jnp.allclose(out3, ref3, atol=5e-2, rtol=5e-2), "mismatch vs reference (bf16)"

    print("KERNEL_OK")
</pallas_src>

<mosaic_0001>
module attributes {stable_mosaic.version = 11 : i64} {
  func.func @_shape_layer_kernel(%arg0: i32, %arg1: i32, %arg2: memref<8x8xf32, #tpu.memory_space<vmem>>, %arg3: memref<8x128xf32, #tpu.memory_space<vmem>>, %arg4: memref<1x128xf32, #tpu.memory_space<vmem>>, %arg5: memref<8x128xf32, #tpu.memory_space<vmem>>) attributes {dimension_semantics = [#tpu.dimension_semantics<parallel>, #tpu.dimension_semantics<parallel>], iteration_bounds = array<i64: 1, 1>, scalar_prefetch = 0 : i64, scratch_operands = 0 : i64, tpu.core_type = #tpu.core_type<tc>, window_params = [{transform_indices = @transform_0, window_bounds = array<i64: 8, 8>}, {transform_indices = @transform_1, window_bounds = array<i64: 8, 128>}, {transform_indices = @transform_2, window_bounds = array<i64: 1, 128>}, {transform_indices = @transform_3, window_bounds = array<i64: 8, 128>}]} {
    %c0 = arith.constant 0 : index
    %c0_0 = arith.constant 0 : index
    %0 = vector.load %arg2[%c0, %c0_0] : memref<8x8xf32, #tpu.memory_space<vmem>>, vector<8x8xf32>
    %c0_1 = arith.constant 0 : index
    %c0_2 = arith.constant 0 : index
    %1 = vector.load %arg3[%c0_1, %c0_2] : memref<8x128xf32, #tpu.memory_space<vmem>>, vector<8x128xf32>
    %cst = arith.constant dense<0.000000e+00> : vector<8x128xf32>
    %2 = tpu.matmul %0, %1, %cst {dimension_numbers = #tpu.dot_dimension_numbers<[1], [0], [0], [1], [0, 0, 1, 1], [], []>} : vector<8x8xf32>, vector<8x128xf32>, vector<8x128xf32> -> vector<8x128xf32>
    %c0_3 = arith.constant 0 : index
    %c0_4 = arith.constant 0 : index
    %3 = vector.load %arg4[%c0_3, %c0_4] : memref<1x128xf32, #tpu.memory_space<vmem>>, vector<1x128xf32>
    %4 = vector.broadcast %3 : vector<1x128xf32> to vector<8x128xf32>
    %5 = arith.addf %2, %4 : vector<8x128xf32>
    %c0_5 = arith.constant 0 : index
    %c0_6 = arith.constant 0 : index
    %6 = vector.load %arg5[%c0_5, %c0_6] : memref<8x128xf32, #tpu.memory_space<vmem>>, vector<8x128xf32>
    tpu.vector_store %arg5[%c0_5, %c0_6], %5 {strides = array<i32>} : memref<8x128xf32, #tpu.memory_space<vmem>>, vector<8x128xf32>,
    return
  }
  func.func @transform_0(%arg0: i32, %arg1: i32) -> (i32, i32) {
    %c0_i32 = arith.constant 0 : i32
    %c0_i32_0 = arith.constant 0 : i32
    return %arg1, %c0_i32 : i32, i32
  }
  func.func @transform_1(%arg0: i32, %arg1: i32) -> (i32, i32) {
    %c0_i32 = arith.constant 0 : i32
    %c0_i32_0 = arith.constant 0 : i32
    return %c0_i32, %arg0 : i32, i32
  }
  func.func @transform_2(%arg0: i32, %arg1: i32) -> (i32, i32) {
    %c0_i32 = arith.constant 0 : i32
    %c0_i32_0 = arith.constant 0 : i32
    return %c0_i32, %arg0 : i32, i32
  }
  func.func @transform_3(%arg0: i32, %arg1: i32) -> (i32, i32) {
    %c0_i32 = arith.constant 0 : i32
    return %arg1, %arg0 : i32, i32
  }
}

</mosaic_0001>

<bundles_post_ra>
// kernel: fwd.1
= control target key start
LH: loop header
LB: loop body
LE: loop exit
PB: predicated region body
PF: predicated region fallthrough
CT: control target
= control target key end

     0   :  { %vm23_vm0 = vcmask 64512   ;;  %v113_v0 = vmov 0.0   ;;  %vm114_vm1 = vmmov 0   ;;  %s147_s1 = inlined_call_operand.vmem [shape: f32[8,128], index: 1, kind: input, shape index: {}]   ;;  %s148_s0 = inlined_call_operand.vmem [shape: f32[8,8], index: 0, kind: input, shape index: {}]   ;;  %s149_s2 = inlined_call_operand.vmem [shape: f32[1,128], index: 2, kind: input, shape index: {}]   ;;  %s150_s3 = inlined_call_operand.vmem [shape: f32[8,128], index: 3, kind: output, shape index: {}]  }
   0x1   :  { %106 = vmatprep.subr.mxu0 %v113_v0  ;;  %v15_v1 = vld [vmem:[%s147_s1] sm:$0xff]  ;;  %108 = vmatprep.mubr.msk.f32.mxu0 %vm114_vm1, %v113_v0 }
   0x2   :  { %v14_v2 = vld [vmem:[%s148_s0] sm:$0xff]  ;;  %107 = vmatpush3.msra.mxu0 %v15_v1 }
   0x3   :  { %109 = vmatmul.mubr.msk.f32.vlgmr.msra.gmra.mrb[0].mxu0 %vm23_vm0, %v14_v2  ;;  %v102_v3 = vld [vmem:[%s149_s2] ss:$0 sm:$0xff] }
  0xd6   :  { %v93_v4 = vpop.f32.mrb[0].mxu0 }
  0xd7   :  { %v94_v5 = vadd.f32 %v102_v3, %v93_v4  ;;  %v110_v6 = vpop.f32.mrb[1].mxu0 }
  0xd9   :  { %97 = vst [vmem:[%s150_s3] sm:$0xff] %v94_v5 }

</bundles_post_ra>
